<compile_context>
chip_gen: v7x
topology: tpu7x:2x2x1
jax: 0.10.0
libtpu: 0.0.40
codegen_flags: <defaults>
</compile_context>

<pallas_src>
import jax
import jax.numpy as jnp
from jax.experimental import pallas as pl
from jax.experimental.pallas import tpu as pltpu

NEG_SLOPE = 0.01  # torch.nn.LeakyReLU default


def _leaky(x):
    return jnp.where(x > 0, x, NEG_SLOPE * x)


def _sigmoid(x):
    return 1.0 / (1.0 + jnp.exp(-x))


def _softmax2(s0, s1):
    m = jnp.maximum(s0, s1)
    e0 = jnp.exp(s0 - m)
    e1 = jnp.exp(s1 - m)
    inv = 1.0 / (e0 + e1)
    return e0 * inv, e1 * inv


def iv_net_kernel(x_ref, w_ref, emb_ref, loss_ref):
    N, F4 = x_ref.shape
    F = F4 // 4
    F2 = 2 * F
    r = 8 * F  # first bias row in the weight slab

    def dot(a, b):
        return jnp.dot(a, b, preferred_element_type=jnp.float32)

    x_all = x_ref[...]                      # (N, 4F) = [za | zb | xa | xb]
    za = x_all[:, 0:F]
    zb = x_all[:, F:F2]
    x_ab = x_all[:, F2:F4]                  # (N, 2F) = [xa | xb]

    # ---- IV_together == 'mlp' gates: ONE matmul gives all 4 scores ----------
    g = dot(x_all, w_ref[0:4 * F, F2:F2 + 4]) + w_ref[r + 0:r + 1, 0:4]   # (N, 4)
    s = _sigmoid(g)
    wa0, wa1 = _softmax2(s[:, 0:1], s[:, 1:2])
    wb0, wb1 = _softmax2(s[:, 2:3], s[:, 3:4])

    iv_z = jnp.concatenate([wa0 * za + wa1 * zb,
                            wb0 * za + wb1 * zb], axis=-1)                 # (N, 2F)

    # ---- mlp_a / mlp_b fused via block-diagonal weights ----------------------
    h = _leaky(dot(iv_z, w_ref[4 * F:6 * F, 0:F2]) + w_ref[r + 1:r + 2, 0:F2])
    out_ab = dot(h, w_ref[4 * F:6 * F, F2:F4]) + w_ref[r + 2:r + 3, 0:F2]  # [out_A|out_B]

    # ---- MSE losses (mean over N*F elements each), one (1,2) store ----------
    d = out_ab - x_ab
    col = jnp.sum(d * d, axis=0, keepdims=True)                            # (1, 2F)
    inv_n = 1.0 / float(N * F)
    la = jnp.sum(col[:, 0:F], axis=-1, keepdims=True) * inv_n
    lb = jnp.sum(col[:, F:F2], axis=-1, keepdims=True) * inv_n
    loss_ref[...] = jnp.concatenate([la, lb], axis=-1)

    # ---- aggregator_a / aggregator_b (update_treatment_type == 'agg') -------
    agg_in = jnp.concatenate([out_ab, x_ab], axis=-1)                      # (N, 4F)
    h1 = _leaky(dot(agg_in, w_ref[0:4 * F, 0:F2]) + w_ref[r + 3:r + 4, 0:F2])
    h2 = _leaky(dot(h1, w_ref[6 * F:8 * F, 0:F]) + w_ref[r + 4:r + 5, 0:F])
    uw = _sigmoid(dot(h2, w_ref[6 * F:7 * F, F:F + 2]) + w_ref[r + 5:r + 6, 0:2])  # (N, 2)

    uw_bc = jnp.concatenate([jnp.broadcast_to(uw[:, 0:1], (N, F)),
                             jnp.broadcast_to(uw[:, 1:2], (N, F))], axis=-1)
    emb_ref[...] = uw_bc * out_ab + (1.0 - uw_bc) * x_ab


def pack_params(params, F):
    """Host-side, ONE-TIME packing of all 28 module tensors into a single
    128-lane-dense slab of shape (8F+8, 4F).  Call once and reuse."""
    assert F % 8 == 0 and F >= 8, "F must be a multiple of 8"
    (ta_wz, ta_wx, ta_b, tb_wz, tb_wx, tb_b,
     ma_w1, ma_b1, ma_w2, ma_b2, mb_w1, mb_b1, mb_w2, mb_b2,
     aa_w1o, aa_w1x, aa_b1, aa_w2, aa_b2, aa_w3, aa_b3,
     ab_w1o, ab_w1x, ab_b1, ab_w2, ab_b2, ab_w3, ab_b3) = params

    F2, F4 = 2 * F, 4 * F
    f32 = jnp.float32

    def bd(a, b):  # block-diagonal stack
        ra, ca = a.shape
        rb, cb = b.shape
        top = jnp.concatenate([a, jnp.zeros((ra, cb), f32)], axis=1)
        bot = jnp.concatenate([jnp.zeros((rb, ca), f32), b], axis=1)
        return jnp.concatenate([top, bot], axis=0)

    z1 = jnp.zeros((F, 1), f32)
    zf = jnp.zeros((F, F), f32)

    # gate weight (4F, 4): columns are pre-sigmoid scores [Aa, Ab, Ba, Bb],
    # rows match the lane-packed activation order [za | zb | xa | xb].
    w_gate = jnp.concatenate([
        jnp.concatenate([ta_wz, z1,    tb_wz, z1   ], axis=1),   # za rows
        jnp.concatenate([z1,    ta_wz, z1,    tb_wz], axis=1),   # zb rows
        jnp.concatenate([ta_wx, ta_wx, z1,    z1   ], axis=1),   # xa rows
        jnp.concatenate([z1,    z1,    tb_wx, tb_wx], axis=1),   # xb rows
    ], axis=0)

    w_mlp1 = bd(ma_w1, mb_w1)                        # (2F, 2F)
    w_mlp2 = bd(ma_w2, mb_w2)                        # (2F, 2F)
    w_agg1 = jnp.concatenate([                       # (4F, 2F), input [outA|outB|xa|xb]
        jnp.concatenate([aa_w1o, zf], axis=1),
        jnp.concatenate([zf, ab_w1o], axis=1),
        jnp.concatenate([aa_w1x, zf], axis=1),
        jnp.concatenate([zf, ab_w1x], axis=1)], axis=0)
    w_agg2 = bd(aa_w2, ab_w2)                        # (2F, F)   (2H == F)
    w_agg3 = bd(aa_w3, ab_w3)                        # (F, 2)

    b_gate = jnp.concatenate([ta_b, ta_b, tb_b, tb_b], axis=1).reshape(4)
    b_mlp1 = jnp.concatenate([ma_b1, mb_b1], axis=1).reshape(F2)
    b_mlp2 = jnp.concatenate([ma_b2, mb_b2], axis=1).reshape(F2)
    b_agg1 = jnp.concatenate([aa_b1, ab_b1], axis=1).reshape(F2)
    b_agg2 = jnp.concatenate([aa_b2, ab_b2], axis=1).reshape(F)
    b_agg3 = jnp.concatenate([aa_b3, ab_b3], axis=1).reshape(2)

    slab = jnp.zeros((8 * F + 8, F4), f32)
    slab = slab.at[0:4 * F, 0:F2].set(w_agg1)
    slab = slab.at[0:4 * F, F2:F2 + 4].set(w_gate)
    slab = slab.at[4 * F:6 * F, 0:F2].set(w_mlp1)
    slab = slab.at[4 * F:6 * F, F2:F4].set(w_mlp2)
    slab = slab.at[6 * F:8 * F, 0:F].set(w_agg2)
    slab = slab.at[6 * F:7 * F, F:F + 2].set(w_agg3)
    r = 8 * F
    slab = slab.at[r + 0, 0:4].set(b_gate)
    slab = slab.at[r + 1, 0:F2].set(b_mlp1)
    slab = slab.at[r + 2, 0:F2].set(b_mlp2)
    slab = slab.at[r + 3, 0:F2].set(b_agg1)
    slab = slab.at[r + 4, 0:F].set(b_agg2)
    slab = slab.at[r + 5, 0:2].set(b_agg3)
    return slab


@jax.jit
def iv_net_forward(za, zb, xa, xb, w_slab):
    """Per-call path: one lane-concat + one pallas_call.  `w_slab` is the
    pre-packed (8F+8, 4F) slab from pack_params (built once, reused)."""
    N, F = za.shape
    x_all = jnp.concatenate([za, zb, xa, xb], axis=-1)          # (N, 4F)

    flops = 2 * N * (4 * F * 4 + 2 * (2 * F) * (2 * F)          # gate + mlp1/2
                     + 4 * F * 2 * F + 2 * F * F + F * 2)       # agg1 + agg2 + agg3
    bytes_acc = 4 * (x_all.size + w_slab.size + N * 2 * F + 2)
    cost = pl.CostEstimate(flops=flops, transcendentals=12 * N,
                           bytes_accessed=bytes_acc)

    vmem = pl.BlockSpec(memory_space=pltpu.MemorySpace.VMEM)
    emb, loss = pl.pallas_call(
        iv_net_kernel,
        out_shape=(jax.ShapeDtypeStruct((N, 2 * F), jnp.float32),  # [emb_A | emb_B]
                   jax.ShapeDtypeStruct((1, 2), jnp.float32)),     # [loss_A, loss_B]
        in_specs=[vmem, vmem],
        out_specs=(vmem, vmem),
        cost_estimate=cost,
    )(x_all, w_slab)
    return emb[:, :F], emb[:, F:], loss[0, 0], loss[0, 1]


def make_params(key, F):
    """Deterministic synthetic parameters, shapes per IV_net.__init__ (weights as (in, out))."""
    ks = iter(jax.random.split(key, 32))

    def w(shape, scale=0.2):
        return scale * jax.random.normal(next(ks), shape, dtype=jnp.float32)

    params = []
    # toge_mlp_a / toge_mlp_b : Linear(2F -> 1), split into z-half and x-half
    for _ in range(2):
        params += [w((F, 1)), w((F, 1)), w((1, 1))]
    # mlp_a / mlp_b : Linear(F,F), Linear(F,F)
    for _ in range(2):
        params += [w((F, F)), w((1, F)), w((F, F)), w((1, F))]
    # aggregator_a / aggregator_b : Linear(2F,F) [split], Linear(F,F//2), Linear(F//2,1)
    for _ in range(2):
        params += [w((F, F)), w((F, F)), w((1, F)),
                   w((F, F // 2)), w((1, F // 2)),
                   w((F // 2, 1)), w((1, 1))]
    return params


def reference_forward(za, zb, xa, xb, params):
    """Pure-JAX mirror of the PyTorch module for correctness checking."""
    (ta_wz, ta_wx, ta_b, tb_wz, tb_wx, tb_b,
     ma_w1, ma_b1, ma_w2, ma_b2, mb_w1, mb_b1, mb_w2, mb_b2,
     aa_w1o, aa_w1x, aa_b1, aa_w2, aa_b2, aa_w3, aa_b3,
     ab_w1o, ab_w1x, ab_b1, ab_w2, ab_b2, ab_w3, ab_b3) = params

    def sig(x): return 1.0 / (1.0 + jnp.exp(-x))
    def lrelu(x): return jnp.where(x > 0, x, NEG_SLOPE * x)

    s_Aa = sig(za @ ta_wz + xa @ ta_wx + ta_b)
    s_Ab = sig(zb @ ta_wz + xa @ ta_wx + ta_b)
    s_Ba = sig(za @ tb_wz + xb @ tb_wx + tb_b)
    s_Bb = sig(zb @ tb_wz + xb @ tb_wx + tb_b)

    wa = jax.nn.softmax(jnp.concatenate([s_Aa, s_Ab], axis=-1), axis=-1)
    wb = jax.nn.softmax(jnp.concatenate([s_Ba, s_Bb], axis=-1), axis=-1)
    iv_z_a = wa[:, 0:1] * za + wa[:, 1:2] * zb
    iv_z_b = wb[:, 0:1] * za + wb[:, 1:2] * zb

    out_a = lrelu(iv_z_a @ ma_w1 + ma_b1) @ ma_w2 + ma_b2
    out_b = lrelu(iv_z_b @ mb_w1 + mb_b1) @ mb_w2 + mb_b2

    loss_a = jnp.mean((out_a - xa) ** 2)
    loss_b = jnp.mean((out_b - xb) ** 2)

    uw_a = sig(lrelu(lrelu(out_a @ aa_w1o + xa @ aa_w1x + aa_b1) @ aa_w2 + aa_b2) @ aa_w3 + aa_b3)
    uw_b = sig(lrelu(lrelu(out_b @ ab_w1o + xb @ ab_w1x + ab_b1) @ ab_w2 + ab_b2) @ ab_w3 + ab_b3)
    emb_a = uw_a * out_a + (1.0 - uw_a) * xa
    emb_b = uw_b * out_b + (1.0 - uw_b) * xb
    return emb_a, emb_b, loss_a, loss_b


if __name__ == "__main__":
    N, F = 8, 32  # batch of nodes, num_node_features

    key = jax.random.PRNGKey(0)
    k_za, k_zb, k_xa, k_xb, k_params = jax.random.split(key, 5)
    za = jax.random.normal(k_za, (N, F), dtype=jnp.float32)
    zb = jax.random.normal(k_zb, (N, F), dtype=jnp.float32)
    xa = jax.random.normal(k_xa, (N, F), dtype=jnp.float32)
    xb = jax.random.normal(k_xb, (N, F), dtype=jnp.float32)
    params = make_params(k_params, F)

    # One-time parameter packing (hoisted out of the per-call path).
    w_slab = jax.block_until_ready(pack_params(params, F))

    emb_a, emb_b, loss_a, loss_b = iv_net_forward(za, zb, xa, xb, w_slab)
    jax.block_until_ready((emb_a, emb_b, loss_a, loss_b))

    # correctness check against a pure-JAX reference
    ref_a, ref_b, ref_la, ref_lb = reference_forward(za, zb, xa, xb, params)
    tol = dict(atol=2e-3, rtol=2e-3)
    assert jnp.allclose(emb_a, ref_a, **tol)
    assert jnp.allclose(emb_b, ref_b, **tol)
    assert jnp.allclose(loss_a, ref_la, **tol)
    assert jnp.allclose(loss_b, ref_lb, **tol)

    print("KERNEL_OK")
</pallas_src>

<mosaic_0001>
module attributes {stable_mosaic.version = 11 : i64} {
  func.func @iv_net_kernel(%arg0: memref<8x128xf32, #tpu.memory_space<vmem>>, %arg1: memref<264x128xf32, #tpu.memory_space<vmem>>, %arg2: memref<8x64xf32, #tpu.memory_space<vmem>>, %arg3: memref<1x2xf32, #tpu.memory_space<vmem>>) attributes {dimension_semantics = [], scalar_prefetch = 0 : i64, scratch_operands = 0 : i64, tpu.core_type = #tpu.core_type<tc>} {
    %c0 = arith.constant 0 : index
    %c0_0 = arith.constant 0 : index
    %0 = vector.load %arg0[%c0, %c0_0] : memref<8x128xf32, #tpu.memory_space<vmem>>, vector<8x128xf32>
    %1 = vector.extract_strided_slice %0 {offsets = [0, 0], sizes = [8, 32], strides = [1, 1]} : vector<8x128xf32> to vector<8x32xf32>
    %2 = vector.extract_strided_slice %0 {offsets = [0, 32], sizes = [8, 32], strides = [1, 1]} : vector<8x128xf32> to vector<8x32xf32>
    %3 = vector.extract_strided_slice %0 {offsets = [0, 64], sizes = [8, 64], strides = [1, 1]} : vector<8x128xf32> to vector<8x64xf32>
    %c0_1 = arith.constant 0 : index
    %c64 = arith.constant 64 : index
    %4 = vector.load %arg1[%c0_1, %c64] : memref<264x128xf32, #tpu.memory_space<vmem>>, vector<128x4xf32>
    %cst = arith.constant dense<0.000000e+00> : vector<8x4xf32>
    %5 = tpu.matmul %0, %4, %cst {dimension_numbers = #tpu.dot_dimension_numbers<[1], [0], [0], [1], [0, 0, 1, 1], [], []>} : vector<8x128xf32>, vector<128x4xf32>, vector<8x4xf32> -> vector<8x4xf32>
    %c256 = arith.constant 256 : index
    %c0_2 = arith.constant 0 : index
    %6 = vector.load %arg1[%c256, %c0_2] : memref<264x128xf32, #tpu.memory_space<vmem>>, vector<1x4xf32>
    %7 = vector.broadcast %6 : vector<1x4xf32> to vector<8x4xf32>
    %8 = arith.addf %5, %7 : vector<8x4xf32>
    %cst_3 = arith.constant 0.000000e+00 : f32
    %9 = vector.broadcast %cst_3 : f32 to vector<8x4xf32>
    %10 = arith.subf %9, %8 : vector<8x4xf32>
    %11 = math.exp %10 : vector<8x4xf32>
    %cst_4 = arith.constant 1.000000e+00 : f32
    %12 = vector.broadcast %cst_4 : f32 to vector<8x4xf32>
    %13 = arith.addf %12, %11 : vector<8x4xf32>
    %cst_5 = arith.constant 1.000000e+00 : f32
    %14 = vector.broadcast %cst_5 : f32 to vector<8x4xf32>
    %15 = arith.divf %14, %13 : vector<8x4xf32>
    %16 = vector.extract_strided_slice %15 {offsets = [0, 0], sizes = [8, 1], strides = [1, 1]} : vector<8x4xf32> to vector<8x1xf32>
    %17 = vector.extract_strided_slice %15 {offsets = [0, 1], sizes = [8, 1], strides = [1, 1]} : vector<8x4xf32> to vector<8x1xf32>
    %18 = arith.maximumf %16, %17 : vector<8x1xf32>
    %19 = arith.subf %16, %18 : vector<8x1xf32>
    %20 = math.exp %19 : vector<8x1xf32>
    %21 = arith.subf %17, %18 : vector<8x1xf32>
    %22 = math.exp %21 : vector<8x1xf32>
    %23 = arith.addf %20, %22 : vector<8x1xf32>
    %cst_6 = arith.constant 1.000000e+00 : f32
    %24 = vector.broadcast %cst_6 : f32 to vector<8x1xf32>
    %25 = arith.divf %24, %23 : vector<8x1xf32>
    %26 = arith.mulf %20, %25 : vector<8x1xf32>
    %27 = arith.mulf %22, %25 : vector<8x1xf32>
    %28 = vector.extract_strided_slice %15 {offsets = [0, 2], sizes = [8, 1], strides = [1, 1]} : vector<8x4xf32> to vector<8x1xf32>
    %29 = vector.extract_strided_slice %15 {offsets = [0, 3], sizes = [8, 1], strides = [1, 1]} : vector<8x4xf32> to vector<8x1xf32>
    %30 = arith.maximumf %28, %29 : vector<8x1xf32>
    %31 = arith.subf %28, %30 : vector<8x1xf32>
    %32 = math.exp %31 : vector<8x1xf32>
    %33 = arith.subf %29, %30 : vector<8x1xf32>
    %34 = math.exp %33 : vector<8x1xf32>
    %35 = arith.addf %32, %34 : vector<8x1xf32>
    %cst_7 = arith.constant 1.000000e+00 : f32
    %36 = vector.broadcast %cst_7 : f32 to vector<8x1xf32>
    %37 = arith.divf %36, %35 : vector<8x1xf32>
    %38 = arith.mulf %32, %37 : vector<8x1xf32>
    %39 = arith.mulf %34, %37 : vector<8x1xf32>
    %40 = vector.broadcast %26 : vector<8x1xf32> to vector<8x32xf32>
    %41 = arith.mulf %40, %1 : vector<8x32xf32>
    %42 = vector.broadcast %27 : vector<8x1xf32> to vector<8x32xf32>
    %43 = arith.mulf %42, %2 : vector<8x32xf32>
    %44 = arith.addf %41, %43 : vector<8x32xf32>
    %45 = vector.broadcast %38 : vector<8x1xf32> to vector<8x32xf32>
    %46 = arith.mulf %45, %1 : vector<8x32xf32>
    %47 = vector.broadcast %39 : vector<8x1xf32> to vector<8x32xf32>
    %48 = arith.mulf %47, %2 : vector<8x32xf32>
    %49 = arith.addf %46, %48 : vector<8x32xf32>
    %50 = tpu.concatenate %44, %49 in 1 : vector<8x32xf32>, vector<8x32xf32> -> vector<8x64xf32>
    %c128 = arith.constant 128 : index
    %c0_8 = arith.constant 0 : index
    %51 = vector.load %arg1[%c128, %c0_8] : memref<264x128xf32, #tpu.memory_space<vmem>>, vector<64x64xf32>
    %cst_9 = arith.constant dense<0.000000e+00> : vector<8x64xf32>
    %52 = tpu.matmul %50, %51, %cst_9 {dimension_numbers = #tpu.dot_dimension_numbers<[1], [0], [0], [1], [0, 0, 1, 1], [], []>} : vector<8x64xf32>, vector<64x64xf32>, vector<8x64xf32> -> vector<8x64xf32>
    %c257 = arith.constant 257 : index
    %c0_10 = arith.constant 0 : index
    %53 = vector.load %arg1[%c257, %c0_10] : memref<264x128xf32, #tpu.memory_space<vmem>>, vector<1x64xf32>
    %54 = vector.broadcast %53 : vector<1x64xf32> to vector<8x64xf32>
    %55 = arith.addf %52, %54 : vector<8x64xf32>
    %cst_11 = arith.constant 0.000000e+00 : f32
    %56 = vector.broadcast %cst_11 : f32 to vector<8x64xf32>
    %57 = arith.cmpf ogt, %55, %56 : vector<8x64xf32>
    %cst_12 = arith.constant 0.00999999977 : f32
    %58 = vector.broadcast %cst_12 : f32 to vector<8x64xf32>
    %59 = arith.mulf %58, %55 : vector<8x64xf32>
    %60 = arith.select %57, %55, %59 : vector<8x64xi1>, vector<8x64xf32>
    %c128_13 = arith.constant 128 : index
    %c64_14 = arith.constant 64 : index
    %61 = vector.load %arg1[%c128_13, %c64_14] : memref<264x128xf32, #tpu.memory_space<vmem>>, vector<64x64xf32>
    %cst_15 = arith.constant dense<0.000000e+00> : vector<8x64xf32>
    %62 = tpu.matmul %60, %61, %cst_15 {dimension_numbers = #tpu.dot_dimension_numbers<[1], [0], [0], [1], [0, 0, 1, 1], [], []>} : vector<8x64xf32>, vector<64x64xf32>, vector<8x64xf32> -> vector<8x64xf32>
    %c258 = arith.constant 258 : index
    %c0_16 = arith.constant 0 : index
    %63 = vector.load %arg1[%c258, %c0_16] : memref<264x128xf32, #tpu.memory_space<vmem>>, vector<1x64xf32>
    %64 = vector.broadcast %63 : vector<1x64xf32> to vector<8x64xf32>
    %65 = arith.addf %62, %64 : vector<8x64xf32>
    %66 = arith.subf %65, %3 : vector<8x64xf32>
    %67 = arith.mulf %66, %66 : vector<8x64xf32>
    %cst_17 = arith.constant dense<0.000000e+00> : vector<64xf32>
    %68 = vector.multi_reduction <add>, %67, %cst_17 [0] : vector<8x64xf32> to vector<64xf32>
    %69 = vector.shape_cast %68 : vector<64xf32> to vector<1x64xf32>
    %70 = vector.extract_strided_slice %69 {offsets = [0, 0], sizes = [1, 32], strides = [1, 1]} : vector<1x64xf32> to vector<1x32xf32>
    %cst_18 = arith.constant dense<0.000000e+00> : vector<1xf32>
    %71 = vector.multi_reduction <add>, %70, %cst_18 [1] : vector<1x32xf32> to vector<1xf32>
    %72 = vector.shape_cast %71 : vector<1xf32> to vector<1x1xf32>
    %cst_19 = arith.constant 3.906250e-03 : f32
    %73 = vector.broadcast %cst_19 : f32 to vector<1x1xf32>
    %74 = arith.mulf %72, %73 : vector<1x1xf32>
    %75 = vector.extract_strided_slice %69 {offsets = [0, 32], sizes = [1, 32], strides = [1, 1]} : vector<1x64xf32> to vector<1x32xf32>
    %cst_20 = arith.constant dense<0.000000e+00> : vector<1xf32>
    %76 = vector.multi_reduction <add>, %75, %cst_20 [1] : vector<1x32xf32> to vector<1xf32>
    %77 = vector.shape_cast %76 : vector<1xf32> to vector<1x1xf32>
    %cst_21 = arith.constant 3.906250e-03 : f32
    %78 = vector.broadcast %cst_21 : f32 to vector<1x1xf32>
    %79 = arith.mulf %77, %78 : vector<1x1xf32>
    %80 = tpu.concatenate %74, %79 in 1 : vector<1x1xf32>, vector<1x1xf32> -> vector<1x2xf32>
    %c0_22 = arith.constant 0 : index
    %c0_23 = arith.constant 0 : index
    %81 = vector.load %arg3[%c0_22, %c0_23] : memref<1x2xf32, #tpu.memory_space<vmem>>, vector<1x2xf32>
    tpu.vector_store %arg3[%c0_22, %c0_23], %80 {strides = array<i32>} : memref<1x2xf32, #tpu.memory_space<vmem>>, vector<1x2xf32>,
    %82 = tpu.concatenate %65, %3 in 1 : vector<8x64xf32>, vector<8x64xf32> -> vector<8x128xf32>
    %c0_24 = arith.constant 0 : index
    %c0_25 = arith.constant 0 : index
    %83 = vector.load %arg1[%c0_24, %c0_25] : memref<264x128xf32, #tpu.memory_space<vmem>>, vector<128x64xf32>
    %cst_26 = arith.constant dense<0.000000e+00> : vector<8x64xf32>
    %84 = tpu.matmul %82, %83, %cst_26 {dimension_numbers = #tpu.dot_dimension_numbers<[1], [0], [0], [1], [0, 0, 1, 1], [], []>} : vector<8x128xf32>, vector<128x64xf32>, vector<8x64xf32> -> vector<8x64xf32>
    %c259 = arith.constant 259 : index
    %c0_27 = arith.constant 0 : index
    %85 = vector.load %arg1[%c259, %c0_27] : memref<264x128xf32, #tpu.memory_space<vmem>>, vector<1x64xf32>
    %86 = vector.broadcast %85 : vector<1x64xf32> to vector<8x64xf32>
    %87 = arith.addf %84, %86 : vector<8x64xf32>
    %cst_28 = arith.constant 0.000000e+00 : f32
    %88 = vector.broadcast %cst_28 : f32 to vector<8x64xf32>
    %89 = arith.cmpf ogt, %87, %88 : vector<8x64xf32>
    %cst_29 = arith.constant 0.00999999977 : f32
    %90 = vector.broadcast %cst_29 : f32 to vector<8x64xf32>
    %91 = arith.mulf %90, %87 : vector<8x64xf32>
    %92 = arith.select %89, %87, %91 : vector<8x64xi1>, vector<8x64xf32>
    %c192 = arith.constant 192 : index
    %c0_30 = arith.constant 0 : index
    %93 = vector.load %arg1[%c192, %c0_30] : memref<264x128xf32, #tpu.memory_space<vmem>>, vector<64x32xf32>
    %cst_31 = arith.constant dense<0.000000e+00> : vector<8x32xf32>
    %94 = tpu.matmul %92, %93, %cst_31 {dimension_numbers = #tpu.dot_dimension_numbers<[1], [0], [0], [1], [0, 0, 1, 1], [], []>} : vector<8x64xf32>, vector<64x32xf32>, vector<8x32xf32> -> vector<8x32xf32>
    %c260 = arith.constant 260 : index
    %c0_32 = arith.constant 0 : index
    %95 = vector.load %arg1[%c260, %c0_32] : memref<264x128xf32, #tpu.memory_space<vmem>>, vector<1x32xf32>
    %96 = vector.broadcast %95 : vector<1x32xf32> to vector<8x32xf32>
    %97 = arith.addf %94, %96 : vector<8x32xf32>
    %cst_33 = arith.constant 0.000000e+00 : f32
    %98 = vector.broadcast %cst_33 : f32 to vector<8x32xf32>
    %99 = arith.cmpf ogt, %97, %98 : vector<8x32xf32>
    %cst_34 = arith.constant 0.00999999977 : f32
    %100 = vector.broadcast %cst_34 : f32 to vector<8x32xf32>
    %101 = arith.mulf %100, %97 : vector<8x32xf32>
    %102 = arith.select %99, %97, %101 : vector<8x32xi1>, vector<8x32xf32>
    %c192_35 = arith.constant 192 : index
    %c32 = arith.constant 32 : index
    %103 = vector.load %arg1[%c192_35, %c32] : memref<264x128xf32, #tpu.memory_space<vmem>>, vector<32x2xf32>
    %cst_36 = arith.constant dense<0.000000e+00> : vector<8x2xf32>
    %104 = tpu.matmul %102, %103, %cst_36 {dimension_numbers = #tpu.dot_dimension_numbers<[1], [0], [0], [1], [0, 0, 1, 1], [], []>} : vector<8x32xf32>, vector<32x2xf32>, vector<8x2xf32> -> vector<8x2xf32>
    %c261 = arith.constant 261 : index
    %c0_37 = arith.constant 0 : index
    %105 = vector.load %arg1[%c261, %c0_37] : memref<264x128xf32, #tpu.memory_space<vmem>>, vector<1x2xf32>
    %106 = vector.broadcast %105 : vector<1x2xf32> to vector<8x2xf32>
    %107 = arith.addf %104, %106 : vector<8x2xf32>
    %cst_38 = arith.constant 0.000000e+00 : f32
    %108 = vector.broadcast %cst_38 : f32 to vector<8x2xf32>
    %109 = arith.subf %108, %107 : vector<8x2xf32>
    %110 = math.exp %109 : vector<8x2xf32>
    %cst_39 = arith.constant 1.000000e+00 : f32
    %111 = vector.broadcast %cst_39 : f32 to vector<8x2xf32>
    %112 = arith.addf %111, %110 : vector<8x2xf32>
    %cst_40 = arith.constant 1.000000e+00 : f32
    %113 = vector.broadcast %cst_40 : f32 to vector<8x2xf32>
    %114 = arith.divf %113, %112 : vector<8x2xf32>
    %115 = vector.extract_strided_slice %114 {offsets = [0, 0], sizes = [8, 1], strides = [1, 1]} : vector<8x2xf32> to vector<8x1xf32>
    %116 = vector.shape_cast %115 : vector<8x1xf32> to vector<8x1xf32>
    %117 = vector.broadcast %116 : vector<8x1xf32> to vector<8x32xf32>
    %118 = vector.extract_strided_slice %114 {offsets = [0, 1], sizes = [8, 1], strides = [1, 1]} : vector<8x2xf32> to vector<8x1xf32>
    %119 = vector.shape_cast %118 : vector<8x1xf32> to vector<8x1xf32>
    %120 = vector.broadcast %119 : vector<8x1xf32> to vector<8x32xf32>
    %121 = tpu.concatenate %117, %120 in 1 : vector<8x32xf32>, vector<8x32xf32> -> vector<8x64xf32>
    %122 = arith.mulf %121, %65 : vector<8x64xf32>
    %cst_41 = arith.constant 1.000000e+00 : f32
    %123 = vector.broadcast %cst_41 : f32 to vector<8x64xf32>
    %124 = arith.subf %123, %121 : vector<8x64xf32>
    %125 = arith.mulf %124, %3 : vector<8x64xf32>
    %126 = arith.addf %122, %125 : vector<8x64xf32>
    %c0_42 = arith.constant 0 : index
    %c0_43 = arith.constant 0 : index
    %127 = vector.load %arg2[%c0_42, %c0_43] : memref<8x64xf32, #tpu.memory_space<vmem>>, vector<8x64xf32>
    tpu.vector_store %arg2[%c0_42, %c0_43], %126 {strides = array<i32>} : memref<8x64xf32, #tpu.memory_space<vmem>>, vector<8x64xf32>,
    return
  }
}

</mosaic_0001>

<bundles_post_ra>
// kernel: iv_net_forward.1
= control target key start
LH: loop header
LB: loop body
LE: loop exit
PB: predicated region body
PF: predicated region fallthrough
CT: control target
= control target key end

     0   :  { %9 = vsyncpa [#allocation3], 0  ;;  %s1230_s12 = smov [#allocation2]   ;;  %s1442_s0 = inlined_call_operand.vmem [shape: f32[8,128], index: 0, kind: input, shape index: {}]   ;;  %s1443_s1 = inlined_call_operand.hbm [shape: f32[264,128], index: 1, kind: input, shape index: {}]   ;;  %s1444_s2 = inlined_call_operand.vmem [shape: f32[8,64], index: 2, kind: output, shape index: {0}]   ;;  %s1445_s3 = inlined_call_operand.vmem [shape: f32[1,2], index: 3, kind: output, shape index: {1}]  }
   0x1   :  { %s17_s13 = sshll.u32 %s1230_s12, 4  ;;  %s1206_s16 = scalar_lea.hbm %s1443_s1, 4224  ;;  %s18_s13 = int_to_ptr.vmem [resolvable:$true] %s17_s13 }
   0x2   :  { %p1207_p0 = scmp.ne.s32.totalorder %s1443_s1, %s1206_s16  ;;  %p1210_p1 = scmp.lt.u32.totalorder %s1206_s16, %s1443_s1 }
   0x4   :  { %p1212_p2 = pnand %p1210_p1, %p1207_p0 }
   0x6   :  { %1215 = shalt.err (!%p1212_p2)
}
   0x7   :  { %s1216_s21 = scalar_lea.vmem %s18_s13, 4224  ;;  %p1221_p4 = scmp.lt.s32.totalorder %s18_s13, %s18_s13 }
   0x8   :  { %p1217_p3 = scmp.ne.s32.totalorder %s18_s13, %s1216_s21  ;;  %p1222_p5 = scmp.lt.s32.totalorder %s1216_s21, %s1216_s21 }
   0xa   :  { %p1223_p6 = por %p1222_p5, %p1221_p4 }
   0xc   :  { %p1224_p7 = pnand %p1223_p6, %p1217_p3 }
   0xe   :  { %1227 = shalt.err (!%p1224_p7)
}
   0xf   :  { %s1231_s22 = smov 128   ;;  %s1232_s23 = smov 8  }
  0x10   :  { %23 = dma.hbm_to_vmem [thread:$0]  %s1443_s1, 4224, %s18_s13, [#allocation3], %s1231_s22, %s1231_s22, %s1232_s23  }
  0x11   :  { %1228 = dma.done.wait [#allocation3], 4224  }
  0x12   :  { %1229 = vsyncadd [#allocation3], 4294963072  ;;  %v1233_v0 = vmov 0.0|0.0   ;;  %v1279_v1 = vld [vmem:[#allocation2] sm:$0xff]  ;;  %v1281_v2 = vld [vmem:[#allocation2 + $0x8] sm:$0xff]  ;;  %s1234_s1 = smov 64  }
  0x13   :  { %1010 = vmatprep.subr.bf16.mxu0 %v1233_v0  ;;  %1034 = vmatprep.subr.bf16.mxu1 %v1233_v0  ;;  %v1283_v3 = vld [vmem:[#allocation2 + $0x10] sm:$0xff]  ;;  %v1115_v4 = vpack.i.bf16 %v1281_v2, %v1279_v1  ;;  %v1287_v5 = vld [vmem:[#allocation2 + $0x18] sm:$0xff]  ;;  %v1289_v6 = vld [vmem:[#allocation2 + $0x20] sm:$0xff]  ;;  %vm1235_vm0 = vmmov 0   ;;  %v1236_v25 = vmov 0.0   ;;  %s1238_s28 = smov 1  }
  0x14   :  { %v1291_v7 = vld [vmem:[#allocation2 + $0x28] sm:$0xff]  ;;  %v1295_v9 = vld [vmem:[#allocation2 + $0x30] sm:$0xff]  ;;  %v1297_v10 = vld [vmem:[#allocation2 + $0x38] sm:$0xff]  ;;  %v1120_v11 = vpack.i.bf16 %v1287_v5, %v1283_v3  ;;  %904 = vmatprep.mubr.msk.f32.mxu0 %vm1235_vm0, %v1236_v25  ;;  %923 = vmatprep.mubr.msk.f32.mxu1 %vm1235_vm0, %v1236_v25  ;;  %s1243_s29 = smov 96   ;;  %s1244_s30 = smov 32   ;;  %vm253_vm1 = vcmask 261120  }
  0x15   :  { %v1125_v8 = vpack.i.bf16 %v1291_v7, %v1289_v6  ;;  %1116 = vrot.lane.b32.xlu0 %v1115_v4, %s1234_s1  ;;  %v1130_v12 = vpack.i.bf16 %v1297_v10, %v1295_v9  ;;  %v1305_v13 = vld [vmem:[#allocation2 + $0x40] sm:$0xff]  ;;  %v1307_v14 = vld [vmem:[#allocation2 + $0x48] sm:$0xff]  ;;  %v1309_v15 = vld [vmem:[#allocation2 + $0x50] sm:$0xff]  ;;  %vm268_vm2 = vcmask 523264   ;;  %vm480_vm5 = vcmask 7168  }
  0x16   :  { %v1311_v16 = vld [vmem:[#allocation2 + $0x58] sm:$0xff]  ;;  %v1135_v17 = vpack.i.bf16 %v1307_v14, %v1305_v13  ;;  %v1319_v19 = vld [vmem:[#allocation2 + $0x60] sm:$0xff]  ;;  %v1321_v20 = vld [vmem:[#allocation2 + $0x68] sm:$0xff]  ;;  %vm482_vm6 = vcmask 8192  }
  0x17   :  { %1126 = vrot.lane.b32.xlu1 %v1125_v8, %s1234_s1  ;;  %v1140_v18 = vpack.i.bf16 %v1311_v16, %v1309_v15  ;;  %v1323_v21 = vld [vmem:[#allocation2 + $0x70] sm:$0xff]  ;;  %v1325_v22 = vld [vmem:[#allocation2 + $0x78] sm:$0xff]  ;;  %v1145_v23 = vpack.i.bf16 %v1321_v20, %v1319_v19  ;;  %v1349_v58 = vld [vmem:[%s1442_s0] sm:$0xff]  ;;  %s1237_s0 = smov 127  }
  0x18   :  { %v1150_v24 = vpack.i.bf16 %v1325_v22, %v1323_v21  ;;  %v796_v59 = vld [vmem:[#allocation2 + $0x100] ss:$0 sm:$0xff] }
  0x19   :  { %1121 = vrot.lane.b32.xlu0 %v1120_v11, %s1234_s1 }
  0x1b   :  { %1131 = vrot.lane.b32.xlu1 %v1130_v12, %s1234_s1 }
  0x1d   :  { %1136 = vrot.lane.b32.xlu0 %v1135_v17, %s1234_s1 }
  0x1f   :  { %1141 = vrot.lane.b32.xlu1 %v1140_v18, %s1234_s1 }
  0x21   :  { %1146 = vrot.lane.b32.xlu0 %v1145_v23, %s1234_s1 }
  0x23   :  { %1151 = vrot.lane.b32.xlu1 %v1150_v24, %s1234_s1 }
  0x87   :  { %v1117_v26 = vpop.permute.xlu0 %1116 }
  0x88   :  { %v1119_v27 = vunpack.i.h.bf16 %v1117_v26  ;;  %v1118_v28 = vunpack.i.l.bf16 %v1117_v26 }
  0x89   :  { %v1127_v29 = vpop.permute.xlu1 %1126 }
  0x8a   :  { %v1011_v30 = vpack.c.bf16 %v1119_v27, %v1118_v28  ;;  %v1129_v34 = vunpack.i.h.bf16 %v1127_v29  ;;  %v1128_v35 = vunpack.i.l.bf16 %v1127_v29 }
  0x8b   :  { %v1122_v31 = vpop.permute.xlu0 %1121 }
  0x8c   :  { %v1124_v32 = vunpack.i.h.bf16 %v1122_v31  ;;  %v1123_v33 = vunpack.i.l.bf16 %v1122_v31  ;;  %1012 = vmatpush3.bf16.msra.mxu0 %v1011_v30  ;;  %v1017_v38 = vpack.c.bf16 %v1129_v34, %v1128_v35  ;;  %v1240_v34 = vmov 1  }
  0x8d   :  { %1013 = vmatprep.subr.bf16.mxu0 %v1233_v0  ;;  %v1132_v36 = vpop.permute.xlu1 %1131  ;;  %1156 = vset.pattern.permute.xlu1 %v1240_v34 }
  0x8e   :  { %v1014_v37 = vpack.c.bf16 %v1124_v32, %v1123_v33  ;;  %v1134_v39 = vunpack.i.h.bf16 %v1132_v36  ;;  %v1133_v40 = vunpack.i.l.bf16 %v1132_v36  ;;  %v1239_v33 = vmov 3  }
  0x8f   :  { %v1137_v41 = vpop.permute.xlu0 %1136  ;;  %1155 = vset.pattern.permute.xlu0 %v1239_v33 }
  0x90   :  { %1015 = vmatpush3.bf16.msra.mxu0 %v1014_v37  ;;  %v1020_v42 = vpack.c.bf16 %v1134_v39, %v1133_v40  ;;  %v1139_v43 = vunpack.i.h.bf16 %v1137_v41  ;;  %v1138_v44 = vunpack.i.l.bf16 %v1137_v41  ;;  %v1241_v39 = vmov 2   ;;  %v255_v41 = vld [vmem:[#allocation2 + $0x80] sm:$0xff] }
  0x91   :  { %1016 = vmatprep.subr.bf16.mxu0 %v1233_v0  ;;  %v1142_v45 = vpop.permute.xlu1 %1141  ;;  %v1242_v40 = vmov 0  }
  0x92   :  { %v1023_v46 = vpack.c.bf16 %v1139_v43, %v1138_v44  ;;  %v1144_v47 = vunpack.i.h.bf16 %v1142_v45  ;;  %v1143_v48 = vunpack.i.l.bf16 %v1142_v45  ;;  %v257_v43 = vld [vmem:[#allocation2 + $0x90] sm:$0xff]  ;;  %v258_v45 = vld [vmem:[#allocation2 + $0x98] sm:$0xff] }
  0x93   :  { %v1147_v49 = vpop.permute.xlu0 %1146 }
  0x94   :  { %1018 = vmatpush3.bf16.msra.mxu0 %v1017_v38  ;;  %v1026_v50 = vpack.c.bf16 %v1144_v47, %v1143_v48  ;;  %v1149_v51 = vunpack.i.h.bf16 %v1147_v49  ;;  %v1148_v52 = vunpack.i.l.bf16 %v1147_v49  ;;  %v259_v47 = vld [vmem:[#allocation2 + $0xa0] sm:$0xff]  ;;  %v260_v48 = vld [vmem:[#allocation2 + $0xa8] sm:$0xff] }
  0x95   :  { %1019 = vmatprep.subr.bf16.mxu0 %v1233_v0  ;;  %v1152_v53 = vpop.permute.xlu1 %1151 }
  0x96   :  { %v1029_v54 = vpack.c.bf16 %v1149_v51, %v1148_v52  ;;  %v1154_v55 = vunpack.i.h.bf16 %v1152_v53  ;;  %v1153_v56 = vunpack.i.l.bf16 %v1152_v53  ;;  %v1041_v51 = vpack.c.bf16 %v260_v48, %v259_v47  ;;  %v261_v53 = vld [vmem:[#allocation2 + $0xb0] sm:$0xff] }
  0x98   :  { %1021 = vmatpush3.bf16.msra.mxu0 %v1020_v42  ;;  %v1032_v57 = vpack.c.bf16 %v1154_v55, %v1153_v56  ;;  %v256_v42 = vld [vmem:[#allocation2 + $0x88] sm:$0xff] }
  0x99   :  { %1022 = vmatprep.subr.bf16.mxu0 %v1233_v0  ;;  %v1035_v44 = vpack.c.bf16 %v256_v42, %v255_v41 }
  0x9b   :  { %1036 = vmatpush3.bf16.msra.mxu1 %v1035_v44  ;;  %v669_v44 = vld [vmem:[#allocation2 + $0xc8] sm:$0xff] }
  0x9c   :  { %1024 = vmatpush3.bf16.msra.mxu0 %v1023_v46  ;;  %v1038_v46 = vpack.c.bf16 %v258_v45, %v257_v43  ;;  %1037 = vmatprep.subr.bf16.mxu1 %v1233_v0 }
  0x9d   :  { %1025 = vmatprep.subr.bf16.mxu0 %v1233_v0 }
  0x9f   :  { %1039 = vmatpush3.bf16.msra.mxu1 %v1038_v46 }
  0xa0   :  { %1027 = vmatpush3.bf16.msra.mxu0 %v1026_v50  ;;  %1040 = vmatprep.subr.bf16.mxu1 %v1233_v0 }
  0xa1   :  { %1028 = vmatprep.subr.bf16.mxu0 %v1233_v0 }
  0xa3   :  { %1042 = vmatpush3.bf16.msra.mxu1 %v1041_v51 }
  0xa4   :  { %1030 = vmatpush3.bf16.msra.mxu0 %v1029_v54  ;;  %v262_v54 = vld [vmem:[#allocation2 + $0xb8] sm:$0xff]  ;;  %1043 = vmatprep.subr.bf16.mxu1 %v1233_v0 }
  0xa5   :  { %1031 = vmatprep.subr.bf16.mxu0 %v1233_v0  ;;  %v1044_v56 = vpack.c.bf16 %v262_v54, %v261_v53 }
  0xa7   :  { %1045 = vmatpush3.bf16.msra.mxu1 %v1044_v56 }
  0xa8   :  { %1033 = vmatpush3.bf16.msra.mxu0 %v1032_v57  ;;  %v1159_v57 = vpack.i.bf16 %v256_v42, %v255_v41  ;;  %1046 = vmatprep.subr.bf16.mxu1 %v1233_v0 }
  0xa9   :  { %1058 = vmatprep.subr.bf16.mxu0 %v1233_v0 }
  0xab   :  { %905 = vmatmul.mubr.f32.vlgmr.msra.gmra.mrb[0].mxu0 %v1349_v58 }
  0xac   :  { %977 = vmatprep.mubr.msk.f32.mxu0 %vm1235_vm0, %v1236_v25 }
 0x17e   :  { %v179_v60 = vpop.f32.mrb[0].mxu0 }
 0x17f   :  { %v180_v61 = vadd.f32 %v796_v59, %v179_v60  ;;  %v906_v62 = vpop.f32.mrb[1].mxu0  ;;  %v1169_v59 = vpack.i.bf16 %v260_v48, %v259_v47  ;;  %v1062_v47 = vpack.c.bf16 %v1287_v5, %v1283_v3  ;;  %v1065_v48 = vpack.c.bf16 %v1291_v7, %v1289_v6  ;;  %v797_v6 = vld [vmem:[#allocation2 + $0x101] ss:$0 sm:$0xff] }
 0x180   :  { %v1074_v3 = vpack.c.bf16 %v1311_v16, %v1309_v15  ;;  %v1077_v5 = vpack.c.bf16 %v1321_v20, %v1319_v19  ;;  %v1080_v15 = vpack.c.bf16 %v1325_v22, %v1323_v21  ;;  %v670_v16 = vld [vmem:[#allocation2 + $0xd0] sm:$0xff]  ;;  %v671_v19 = vld [vmem:[#allocation2 + $0xd8] sm:$0xff] }
 0x181   :  { %v183_v63 = vsub.f32 0.0, %v180_v61  ;;  %v1184_v20 = vpack.i.bf16 %v671_v19, %v670_v16 }
 0x183   :  { %v184_v4 = vmul.f32 1.442695, %v183_v63 }
 0x185   :  { %1192 = vpow2.f32 %v184_v4  ;;  %v1164_v4 = vpack.i.bf16 %v258_v45, %v257_v43  ;;  %v668_v43 = vld [vmem:[#allocation2 + $0xc0] sm:$0xff]  ;;  %v1059_v45 = vpack.c.bf16 %v1281_v2, %v1279_v1  ;;  %v1068_v1 = vpack.c.bf16 %v1297_v10, %v1295_v9 }
 0x186   :  { %v1179_v46 = vpack.i.bf16 %v669_v44, %v668_v43  ;;  %v1071_v2 = vpack.c.bf16 %v1307_v14, %v1305_v13 }
 0x187   :  { %1060 = vmatpush3.bf16.msra.mxu0 %v1059_v45 }
 0x188   :  { %1061 = vmatprep.subr.bf16.mxu0 %v1233_v0 }
 0x18b   :  { %1063 = vmatpush3.bf16.msra.mxu0 %v1062_v47  ;;  %v802_v47 = vld [vmem:[#allocation2 + $0x104] ss:$0 sm:$0xff] }
 0x18c   :  { %1064 = vmatprep.subr.bf16.mxu0 %v1233_v0 }
 0x18f   :  { %v1193_v8 = vpop.eup %1192  ;;  %1066 = vmatpush3.bf16.msra.mxu0 %v1065_v48 }
 0x190   :  { %v186_v11 = vadd.f32 1.0, %v1193_v8  ;;  %v1174_v8 = vpack.i.bf16 %v262_v54, %v261_v53  ;;  %1067 = vmatprep.subr.bf16.mxu0 %v1233_v0 }
 0x192   :  { %1194 = vrcp.f32 %v186_v11 }
 0x193   :  { %1069 = vmatpush3.bf16.msra.mxu0 %v1068_v1 }
 0x194   :  { %1070 = vmatprep.subr.bf16.mxu0 %v1233_v0 }
 0x197   :  { %1072 = vmatpush3.bf16.msra.mxu0 %v1071_v2 }
 0x198   :  { %1073 = vmatprep.subr.bf16.mxu0 %v1233_v0 }
 0x19b   :  { %1075 = vmatpush3.bf16.msra.mxu0 %v1074_v3 }
 0x19c   :  { %v1195_v12 = vpop.eup %1194  ;;  %1076 = vmatprep.subr.bf16.mxu0 %v1233_v0 }
 0x19d   :  { %190 = vrot.lane.b32.xlu0 %v1195_v12, %s1237_s0 }
 0x19f   :  { %1078 = vmatpush3.bf16.msra.mxu0 %v1077_v5 }
 0x1a0   :  { %1079 = vmatprep.subr.bf16.mxu0 %v1233_v0 }
 0x1a3   :  { %1081 = vmatpush3.bf16.msra.mxu0 %v1080_v15 }
 0x20f   :  { %v191_v17 = vpop.permute.xlu0 %190 }
 0x210   :  { %v193_v18 = vmax.f32 %v1195_v12, %v191_v17 }
 0x212   :  { %198 = vrot.lane.b32.xlu1 %v193_v18, %s1238_s28  ;;  %v194_v28 = vsub.f32 %v1195_v12, %v193_v18 }
 0x214   :  { %v195_v29 = vmul.f32 1.442695, %v194_v28 }
 0x284   :  { %v199_v23 = vpop.permute.xlu1 %198 }
 0x285   :  { %v201_v24 = vsub.f32 %v1195_v12, %v199_v23 }
 0x287   :  { %v202_v26 = vmul.f32 1.442695, %v201_v24 }
 0x289   :  { %1196 = vpow2.f32 %v202_v26 }
 0x28a   :  { %1198 = vpow2.f32 %v195_v29 }
 0x293   :  { %v1197_v27 = vpop.eup %1196 }
 0x294   :  { %205 = vrot.lane.b32.xlu0 %v1197_v27, %s1237_s0  ;;  %v1199_v30 = vpop.eup %1198 }
 0x306   :  { %v206_v31 = vpop.permute.xlu0 %205 }
 0x307   :  { %v208_v32 = vadd.f32 %v1199_v30, %v206_v31 }
 0x309   :  { %1200 = vrcp.f32 %v208_v32 }
 0x313   :  { %v1201_v35 = vpop.eup %1200 }
 0x314   :  { %213 = vrot.lane.b32.xlu1 %v1201_v35, %s1238_s28  ;;  %v211_v36 = vmul.f32 %v1201_v35, %v1199_v30 }
 0x386   :  { %v214_v37 = vpop.permute.xlu1 %213 }
 0x387   :  { %v216_v38 = vmul.f32 %v1197_v27, %v214_v37 }
 0x389   :  { %225 = vperm.xlu1 %1156, %v216_v38   ;;  %240 = vperm.xlu0 %1155, %v216_v38  }
 0x38d   :  { %1157 = vset.pattern.permute.xlu1 %v1241_v39  ;;  %1189 = vset.pattern.permute.xlu0 %v1242_v40 }
 0x38e   :  { %235 = vperm.xlu1 %1157, %v211_v36  }
 0x392   :  { %1158 = vset.pattern.permute.xlu1 %v1242_v40 }
 0x393   :  { %219 = vperm.xlu1 %1158, %v211_v36  }
 0x397   :  { %1190 = vset.pattern.permute.xlu1 %v1240_v34 }
 0x408   :  { %v241_v49 = vpop.permute.xlu0 %240  ;;  %v226_v52 = vpop.permute.xlu1 %225 }
 0x409   :  { %v243_v50 = vmul.f32 %v241_v49, %v1349_v58  ;;  %v228_v55 = vmul.f32 %v226_v52, %v1349_v58 }
 0x40b   :  { %245 = vrot.lane.b32.xlu0 %v243_v50, %s1243_s29  ;;  %v799_v50 = vld [vmem:[#allocation2 + $0x102] ss:$0 sm:$0xff] }
 0x40d   :  { %v236_v60 = vpop.permute.xlu1 %235 }
 0x40e   :  { %v238_v61 = vmul.f32 %v236_v60, %v1349_v58 }
 0x40f   :  { %230 = vrot.lane.b32.xlu0 %v228_v55, %s1243_s29 }
 0x412   :  { %v220_v17 = vpop.permute.xlu1 %219 }
 0x413   :  { %1160 = vrot.lane.b32.xlu0 %v1159_v57, %s1234_s1  ;;  %v222_v24 = vmul.f32 %v220_v17, %v1349_v58 }
 0x417   :  { %1170 = vrot.lane.b32.xlu0 %v1169_v59, %s1234_s1 }
 0x41b   :  { %1180 = vrot.lane.b32.xlu0 %v1179_v46, %s1243_s29 }
 0x41f   :  { %456 = vrot.lane.b32.xlu0 %v1349_v58, %s1234_s1 }
 0x47d   :  { %v246_v62 = vpop.permute.xlu0 %245 }
 0x47e   :  { %v248_v63 = vadd.f32 %v246_v62, %v238_v61 }
 0x480   :  { %250 = vrot.lane.b32.xlu1 %v248_v63, %s1244_s30 }
 0x481   :  { %v231_v11 = vpop.permute.xlu0 %230 }
 0x482   :  { %v233_v26 = vadd.f32 %v231_v11, %v222_v24  ;;  %v1086_v11 = vpack.c.bf16 %v671_v19, %v670_v16 }
 0x484   :  { %1165 = vrot.lane.b32.xlu1 %v1164_v4, %s1234_s1 }
 0x485   :  { %v1161_v12 = vpop.permute.xlu0 %1160 }
 0x486   :  { %v1163_v18 = vunpack.i.h.bf16 %v1161_v12  ;;  %v1162_v23 = vunpack.i.l.bf16 %v1161_v12  ;;  %v584_v12 = vld [vmem:[#allocation2 + $0xe8] sm:$0xff] }
 0x488   :  { %1175 = vrot.lane.b32.xlu1 %v1174_v8, %s1234_s1  ;;  %v1047_v27 = vpack.c.bf16 %v1163_v18, %v1162_v23  ;;  %v1083_v8 = vpack.c.bf16 %v669_v44, %v668_v43  ;;  %v585_v18 = vld [vmem:[#allocation2 + $0xf0] sm:$0xff]  ;;  %v586_v23 = vld [vmem:[#allocation2 + $0xf8] sm:$0xff] }
 0x489   :  { %v1171_v30 = vpop.permute.xlu0 %1170  ;;  %v1092_v24 = vpack.c.bf16 %v586_v23, %v585_v18 }
 0x48a   :  { %v1173_v35 = vunpack.i.h.bf16 %v1171_v30  ;;  %v1172_v36 = vunpack.i.l.bf16 %v1171_v30 }
 0x48c   :  { %v1053_v39 = vpack.c.bf16 %v1173_v35, %v1172_v36  ;;  %1185 = vrot.lane.b32.xlu1 %v1184_v20, %s1243_s29 }
 0x48d   :  { %v1181_v49 = vpop.permute.xlu0 %1180 }
 0x48e   :  { %v1182_v30 = vunpack.i.l.bf16 %v1181_v49 }
 0x491   :  { %v1409_v52 = vpop.permute.xlu0 %456 }
 0x4f2   :  { %v251_v28 = vpop.permute.xlu1 %250 }
 0x4f3   :  { %v254_v29 = vsel %vm253_vm1, %v233_v26, %v251_v28 }
 0x4f4   :  { %924 = vmatmul.mubr.msk.f32.vlgmr.msra.gmra.mrb[0].mxu1 %vm268_vm2, %v254_v29  ;;  %v1183_v29 = vunpack.i.h.bf16 %v1181_v49 }
 0x4f5   :  { %1048 = vmatpush3.bf16.msra.mxu1 %v1047_v27  ;;  %942 = vmatprep.mubr.msk.f32.mxu1 %vm1235_vm0, %v1236_v25 }
 0x4f6   :  { %v1166_v31 = vpop.permute.xlu1 %1165  ;;  %1049 = vmatprep.subr.bf16.mxu1 %v1233_v0  ;;  %v1095_v36 = vpack.c.bf16 %v1183_v29, %v1182_v30 }
 0x4f7   :  { %v1168_v32 = vunpack.i.h.bf16 %v1166_v31  ;;  %v1167_v33 = vunpack.i.l.bf16 %v1166_v31  ;;  %v801_v31 = vld [vmem:[#allocation2 + $0x103] ss:$0 sm:$0xff] }
 0x4f9   :  { %v1050_v37 = vpack.c.bf16 %v1168_v32, %v1167_v33 }
 0x4fa   :  { %v1176_v38 = vpop.permute.xlu1 %1175 }
 0x4fb   :  { %1051 = vmatpush3.bf16.msra.mxu1 %v1050_v37  ;;  %v1178_v40 = vunpack.i.h.bf16 %v1176_v38  ;;  %v1177_v41 = vunpack.i.l.bf16 %v1176_v38 }
 0x4fc   :  { %1052 = vmatprep.subr.bf16.mxu1 %v1233_v0 }
 0x4fd   :  { %v1056_v42 = vpack.c.bf16 %v1178_v40, %v1177_v41 }
 0x4fe   :  { %v1186_v26 = vpop.permute.xlu1 %1185 }
 0x4ff   :  { %1054 = vmatpush3.bf16.msra.mxu1 %v1053_v39  ;;  %v1188_v37 = vunpack.i.h.bf16 %v1186_v26  ;;  %v1187_v38 = vunpack.i.l.bf16 %v1186_v26 }
 0x500   :  { %1055 = vmatprep.subr.bf16.mxu1 %v1233_v0 }
 0x501   :  { %v1098_v41 = vpack.c.bf16 %v1188_v37, %v1187_v38 }
 0x503   :  { %1057 = vmatpush3.bf16.msra.mxu1 %v1056_v42 }
 0x504   :  { %1082 = vmatprep.subr.bf16.mxu1 %v1233_v0 }
 0x5c7   :  { %v338_v7 = vpop.f32.mrb[0].mxu1 }
 0x5c8   :  { %v339_v9 = vadd.f32 %v797_v6, %v338_v7  ;;  %v925_v10 = vpop.f32.mrb[1].mxu1 }
 0x5ca   :  { %vm342_vm3 = vcmp.gt.f32.partialorder %v339_v9, 0.0  ;;  %v343_v13 = vmul.f32 0.01, %v339_v9 }
 0x5cc   :  { %v344_v14 = vsel %vm342_vm3, %v339_v9, %v343_v13 }
 0x5cd   :  { %943 = vmatmul.mubr.msk.f32.vlgmr.msra.gmra.mrb[2].mxu1 %vm268_vm2, %v344_v14 }
 0x5ce   :  { %996 = vmatprep.mubr.msk.f32.mxu1 %vm1235_vm0, %v1236_v25  ;;  %1084 = vmatpush3.bf16.msra.mxu1 %v1083_v8 }
 0x5cf   :  { %1085 = vmatprep.subr.bf16.mxu1 %v1233_v0 }
 0x5d2   :  { %1087 = vmatpush3.bf16.msra.mxu1 %v1086_v11 }
 0x5d3   :  { %1088 = vmatprep.subr.bf16.mxu1 %v1233_v0 }
 0x6a0   :  { %v451_v51 = vpop.f32.mrb[2].mxu1 }
 0x6a1   :  { %v1411_v53 = vadd.f32 %v799_v50, %v451_v51  ;;  %v944_v54 = vpop.f32.mrb[3].mxu1 }
 0x6a3   :  { %v459_v55 = vsub.f32 %v1411_v53, %v1409_v52  ;;  %v484_v21 = vsel %vm268_vm2, %v1411_v53, %v1349_v58  ;;  %v583_v58 = vld [vmem:[#allocation2 + $0xe0] sm:$0xff] }
 0x6a4   :  { %978 = vmatmul.mubr.f32.vlgmr.msra.gmra.mrb[2].mxu0 %v484_v21  ;;  %v1089_v17 = vpack.c.bf16 %v584_v12, %v583_v58 }
 0x6a5   :  { %v460_v22 = vmul.f32 %v459_v55, %v459_v55 }
 0x6a6   :  { %1090 = vmatpush3.bf16.msra.mxu1 %v1089_v17 }
 0x6a7   :  { %v461_v56 = vsel %vm268_vm2, %v460_v22, 0.0  ;;  %1091 = vmatprep.subr.bf16.mxu1 %v1233_v0 }
 0x6a8   :  { %v462_v57 = vrot.slane %v461_v56, 4 }
 0x6aa   :  { %v463_v59 = vadd.f32 %v462_v57, %v461_v56  ;;  %1093 = vmatpush3.bf16.msra.mxu1 %v1092_v24 }
 0x6ab   :  { %1094 = vmatprep.subr.bf16.mxu1 %v1233_v0 }
 0x6ac   :  { %v464_v60 = vrot.slane %v463_v59, 2 }
 0x6ae   :  { %v465_v61 = vadd.f32 %v464_v60, %v463_v59 }
 0x6b0   :  { %v466_v62 = vrot.slane %v465_v61, 1 }
 0x6b2   :  { %v467_v63 = vadd.f32 %v466_v62, %v465_v61 }
 0x6b4   :  { %473 = vrot.lane.b32.xlu1 %v467_v63, %s1243_s29  ;;  %v468_v4 = vsel %vm253_vm1, %v467_v63, 0.0 }
 0x6b5   :  { %469 = vadd.xlane.f32.xlu0 %v468_v4 }
 0x726   :  { %v474_v27 = vpop.permute.xlu1 %473 }
 0x727   :  { %v476_v28 = vsel %vm253_vm1, %v474_v27, 0.0 }
 0x728   :  { %477 = vadd.xlane.f32.xlu1 %v476_v28 }
 0x742   :  { %v470_v42 = vpop.xlane.xlu0 %469 }
 0x743   :  { %v471_v44 = vmul.f32 0.00390625, %v470_v42 }
 0x777   :  { %v572_v32 = vpop.f32.mrb[2].mxu0 }
 0x778   :  { %v573_v33 = vadd.f32 %v801_v31, %v572_v32  ;;  %v979_v35 = vpop.f32.mrb[3].mxu0 }
 0x77a   :  { %vm576_vm4 = vcmp.gt.f32.partialorder %v573_v33, 0.0  ;;  %v577_v39 = vmul.f32 0.01, %v573_v33 }
 0x77c   :  { %v578_v40 = vsel %vm576_vm4, %v573_v33, %v577_v39 }
 0x77d   :  { %997 = vmatmul.mubr.msk.f32.vlgmr.msra.gmra.mrb[4].mxu1 %vm268_vm2, %v578_v40 }
 0x77e   :  { %1096 = vmatpush3.bf16.msra.mxu1 %v1095_v36  ;;  %1007 = vmatprep.mubr.msk.f32.mxu1 %vm1235_vm0, %v1236_v25 }
 0x77f   :  { %1097 = vmatprep.subr.bf16.mxu1 %v1233_v0  ;;  %v804_v0 = vld [vmem:[#allocation2 + $0x105] ss:$0 sm:$0xff] }
 0x782   :  { %1099 = vmatpush3.bf16.msra.mxu1 %v1098_v41 }
 0x7b5   :  { %v478_v43 = vpop.xlane.xlu1 %477 }
 0x7b6   :  { %v479_v45 = vmul.f32 0.00390625, %v478_v43 }
 0x7b8   :  { %v481_v46 = vsel %vm480_vm5, %v471_v44, %v479_v45 }
 0x7b9   :  { %483 = vst.msk [vmem:[%s1445_s3] sm:$0x1] %vm482_vm6, %v481_v46 }
 0x850   :  { %v661_v48 = vpop.f32.mrb[4].mxu1 }
 0x851   :  { %v662_v1 = vadd.f32 %v802_v47, %v661_v48  ;;  %v998_v2 = vpop.f32.mrb[5].mxu1 }
 0x853   :  { %vm665_vm7 = vcmp.gt.f32.partialorder %v662_v1, 0.0  ;;  %v666_v25 = vmul.f32 0.01, %v662_v1 }
 0x855   :  { %v667_v3 = vsel %vm665_vm7, %v662_v1, %v666_v25 }
 0x856   :  { %1008 = vmatmul.mubr.msk.f32.vlgmr.msra.gmra.mrb[6].mxu1 %vm253_vm1, %v667_v3 }
 0x929   :  { %v762_v5 = vpop.f32.mrb[6].mxu1 }
 0x92a   :  { %v763_v6 = vadd.f32 %v804_v0, %v762_v5  ;;  %v1009_v7 = vpop.f32.mrb[7].mxu1 }
 0x92c   :  { %v766_v9 = vsub.f32 0.0, %v763_v6 }
 0x92e   :  { %v767_v10 = vmul.f32 1.442695, %v766_v9 }
 0x930   :  { %1202 = vpow2.f32 %v767_v10 }
 0x93a   :  { %v1203_v13 = vpop.eup %1202 }
 0x93b   :  { %v769_v14 = vadd.f32 1.0, %v1203_v13 }
 0x93d   :  { %1204 = vrcp.f32 %v769_v14 }
 0x947   :  { %v1205_v15 = vpop.eup %1204 }
 0x948   :  { %778 = vperm.xlu1 %1190, %v1205_v15   ;;  %774 = vperm.xlu0 %1189, %v1205_v15  }
 0x94c   :  { %1191 = vset.pattern.permute.xlu0 %v1240_v34 }
 0x9c7   :  { %v779_v16 = vpop.permute.xlu1 %778  ;;  %v775_v19 = vpop.permute.xlu0 %774 }
 0x9c8   :  { %v781_v20 = vsel %vm253_vm1, %v775_v19, %v779_v16 }
 0x9c9   :  { %v783_v49 = vsub.f32 1.0, %v781_v20  ;;  %v782_v50 = vmul.f32 %v781_v20, %v1411_v53 }
 0x9cb   :  { %v784_v51 = vmul.f32 %v783_v49, %v1409_v52 }
 0x9cd   :  { %v785_v54 = vadd.f32 %v784_v51, %v782_v50 }
 0x9cf   :  { %786 = vst.msk [vmem:[%s1444_s2] sm:$0xff] %vm268_vm2, %v785_v54 }
 0x9d0   :  { %795 = vsyncpa [#allocation3], 1 }

</bundles_post_ra>
